<compile_context>
chip_gen: v6e
topology: v6e:2x2x1
jax: 0.10.0
libtpu: 0.0.40
codegen_flags: <defaults>
</compile_context>

<pallas_src>
import functools

import jax
import jax.numpy as jnp
from jax.experimental import pallas as pl
from jax.experimental.pallas import tpu as pltpu

_LANE = 128
_SMALL_ROWS = 256  # below this, a fused-XLA fallback beats the custom call


def _round_up(x: int, m: int) -> int:
    return ((x + m - 1) // m) * m


def _compute_vmem_budget() -> int:
    """Per-call VMEM budget: ~3/4 of physical capacity, capped at 96 MiB."""
    try:
        cap = int(pltpu.get_tpu_info().vmem_capacity_bytes)
    except Exception:
        cap = 64 * 1024 * 1024  # conservative (v7x per-TC) fallback
    return min(3 * cap // 4, 96 * 1024 * 1024)


_VMEM_BUDGET = _compute_vmem_budget()


# ----------------------------------------------------------------------------
# Kernel
# ----------------------------------------------------------------------------
def _vl_mapper_kernel(x_ref, w1_ref, b1_ref, w2_ref, b2_ref, o_ref):
    # x_ref:  [TR, C_in]      (native dtype)   w1_ref: [C_in, H_p]    (bf16)
    # b1_ref: [1, H_p]        (f32)            w2_ref: [H_p, C_out_p] (bf16)
    # b2_ref: [1, C_out_p]    (f32)            o_ref:  [TR, C_out_p]  (out dtype)
    x = x_ref[...].astype(w1_ref.dtype)  # in-kernel bf16 cast (no host pre-pass)
    # First linear: MXU bf16 matmul, f32 accumulate, f32 bias + ReLU (VPU).
    h = jnp.dot(x, w1_ref[...], preferred_element_type=jnp.float32)
    h = jnp.maximum(h + b1_ref[...], 0.0)
    # Second linear: deliberate bf16 downcast of the ReLU intermediate.
    y = jnp.dot(h.astype(w2_ref.dtype), w2_ref[...],
                preferred_element_type=jnp.float32)
    y = y + b2_ref[...]
    o_ref[...] = y.astype(o_ref.dtype)


# ----------------------------------------------------------------------------
# One-time parameter preparation (hoisted out of the per-call path)
# ----------------------------------------------------------------------------
def prepare_projection_params(w1, b1, w2, b2, compute_dtype=jnp.bfloat16):
    """Pad H / C_out up to multiples of 128 (zero fill -> exact) and cast.

    w1: [C_in, H], b1: [H], w2: [H, C_out], b2: [C_out]
    Returns (w1p, b1p, w2p, b2p, c_out) ready for vl_mapper_projection.
    """
    C_in, H = w1.shape
    H2, C_out = w2.shape
    assert H == H2 and b1.shape == (H,) and b2.shape == (C_out,)
    H_p = _round_up(H, _LANE)
    C_out_p = _round_up(C_out, _LANE)

    w1p = jnp.pad(jnp.asarray(w1), ((0, 0), (0, H_p - H))).astype(compute_dtype)
    w2p = jnp.pad(jnp.asarray(w2), ((0, H_p - H), (0, C_out_p - C_out))).astype(compute_dtype)
    b1p = jnp.pad(jnp.asarray(b1), (0, H_p - H)).astype(jnp.float32).reshape(1, H_p)
    b2p = jnp.pad(jnp.asarray(b2), (0, C_out_p - C_out)).astype(jnp.float32).reshape(1, C_out_p)
    return w1p, b1p, w2p, b2p, int(C_out)


# ----------------------------------------------------------------------------
# Forward
# ----------------------------------------------------------------------------
@functools.partial(jax.jit,
                   static_argnames=("c_out", "out_dtype", "row_tile", "use_pallas"))
def vl_mapper_projection(gloss_feature, w1p, b1p, w2p, b2p, *, c_out,
                         out_dtype=None, row_tile=None, use_pallas=None):
    """relu(x @ W1 + b1) @ W2 + b2 over the flattened [B*T, C_in] slab.

    gloss_feature: [B, T, C_in] (any float dtype; cast to bf16 in-kernel)
    w1p/b1p/w2p/b2p: outputs of prepare_projection_params
    Returns [B, T, c_out] in out_dtype (default: gloss_feature.dtype).
    """
    B, T, C_in = gloss_feature.shape
    H_p = w1p.shape[1]
    C_out_p = w2p.shape[1]
    rows = B * T
    out_dtype = jnp.dtype(out_dtype) if out_dtype is not None else gloss_feature.dtype

    if use_pallas is None:
        use_pallas = rows > _SMALL_ROWS

    # ---- tiny-problem fallback: let XLA fuse; launch/DMA overhead dominates.
    if not use_pallas:
        x = gloss_feature.astype(w1p.dtype)
        h = jnp.maximum(
            jnp.dot(x, w1p, preferred_element_type=jnp.float32) + b1p, 0.0)
        y = jnp.dot(h.astype(w2p.dtype), w2p,
                    preferred_element_type=jnp.float32) + b2p
        return y[..., :c_out].astype(out_dtype)

    x2d = gloss_feature.reshape(rows, C_in)
    in_bytes = x2d.dtype.itemsize
    out_bytes = out_dtype.itemsize

    # ---- row-tile selection under the per-generation VMEM budget ------------
    # Resident operands (double-buffered by default pipelining):
    weight_bytes = 2 * (w1p.size * w1p.dtype.itemsize
                        + w2p.size * w2p.dtype.itemsize
                        + b1p.size * 4 + b2p.size * 4)

    def tile_bytes(tr):
        return (2 * tr * C_in * in_bytes            # x double buffer (native dtype)
                + 2 * tr * C_out_p * out_bytes      # output double buffer
                + tr * H_p * 4 + tr * C_out_p * 4)  # f32 intermediates headroom

    if row_tile is None:
        row_tile = 256
        for cand in (2048, 1024, 512, 256):
            if weight_bytes + tile_bytes(cand) <= _VMEM_BUDGET:
                row_tile = cand
                break
    # Full-dim block when the problem is smaller than one tile (always legal),
    # otherwise a multiple-of-8 tile with a ragged (masked) last block.
    TR = rows if rows <= row_tile else row_tile
    num_tiles = pl.cdiv(rows, TR)

    # ---- cost estimate (helps XLA schedule around the custom call) ----------
    flops = 2 * rows * (C_in * H_p + H_p * C_out_p)
    bytes_accessed = (rows * C_in * in_bytes
                      + rows * C_out_p * out_bytes
                      + (C_in * H_p + H_p * C_out_p) * 2
                      + (H_p + C_out_p) * 4)
    cost = pl.CostEstimate(flops=flops, transcendentals=0,
                           bytes_accessed=bytes_accessed)

    out2d = pl.pallas_call(
        _vl_mapper_kernel,
        out_shape=jax.ShapeDtypeStruct((rows, C_out_p), out_dtype),
        grid=(num_tiles,),
        in_specs=[
            pl.BlockSpec((TR, C_in), lambda i: (i, 0)),       # x: row-tiled
            pl.BlockSpec((C_in, H_p), lambda i: (0, 0)),      # w1: resident
            pl.BlockSpec((1, H_p), lambda i: (0, 0)),         # b1: resident
            pl.BlockSpec((H_p, C_out_p), lambda i: (0, 0)),   # w2: resident
            pl.BlockSpec((1, C_out_p), lambda i: (0, 0)),     # b2: resident
        ],
        out_specs=pl.BlockSpec((TR, C_out_p), lambda i: (i, 0)),
        compiler_params=pltpu.CompilerParams(
            dimension_semantics=("parallel",),     # 2-TC row sharding on v7x
            vmem_limit_bytes=_VMEM_BUDGET,
        ),
        cost_estimate=cost,
    )(x2d, w1p, b1p, w2p, b2p)

    # Slice lane padding only when C_out is ragged (typical 512/768/1024 skip it).
    if C_out_p != c_out:
        out2d = out2d[:, :c_out]
    return out2d.reshape(B, T, c_out)


# TODO(synk): type='embedding' branch (bias-free Linear with gloss-embedding
# weight init) is a single matmul; not implemented since default cfg type is
# 'projection'.


if __name__ == "__main__":
    # Small shapes consistent with the module: hidden_size == out_features.
    B, T = 2, 8
    in_features = 32
    out_features = 32  # also the hidden size for type='projection'

    key = jax.random.PRNGKey(0)
    kx, kw1, kb1, kw2, kb2, kx2 = jax.random.split(key, 6)

    # Deterministic synthetic parameters (PyTorch-Linear-like uniform init).
    lim1 = 1.0 / jnp.sqrt(in_features)
    lim2 = 1.0 / jnp.sqrt(out_features)
    w1 = jax.random.uniform(kw1, (in_features, out_features),
                            minval=-lim1, maxval=lim1, dtype=jnp.float32)
    b1 = jax.random.uniform(kb1, (out_features,),
                            minval=-lim1, maxval=lim1, dtype=jnp.float32)
    w2 = jax.random.uniform(kw2, (out_features, out_features),
                            minval=-lim2, maxval=lim2, dtype=jnp.float32)
    b2 = jax.random.uniform(kb2, (out_features,),
                            minval=-lim2, maxval=lim2, dtype=jnp.float32)

    # One-time weight preparation (hoisted out of the forward path).
    w1p, b1p, w2p, b2p, c_out = prepare_projection_params(w1, b1, w2, b2)

    gloss_feature = jax.random.normal(kx, (B, T, in_features), dtype=jnp.float32)
    visual_outputs = {"gloss_feature": gloss_feature}

    def ref(x):  # f32 reference of the PyTorch forward
        return jnp.maximum(x @ w1 + b1, 0.0) @ w2 + b2

    # 1) Pallas path at the small module-consistent shape (forced; the auto
    #    dispatcher would route rows=16 to the fused-XLA fallback).
    out = vl_mapper_projection(visual_outputs["gloss_feature"],
                               w1p, b1p, w2p, b2p, c_out=c_out, use_pallas=True)
    out = jax.block_until_ready(out)
    assert out.shape == (B, T, out_features) and out.dtype == gloss_feature.dtype
    assert jnp.allclose(out, ref(gloss_feature), atol=5e-2, rtol=5e-2), (
        float(jnp.max(jnp.abs(out - ref(gloss_feature)))))

    # 2) Auto dispatch at the same tiny shape -> fused-XLA fallback.
    out_small = jax.block_until_ready(
        vl_mapper_projection(gloss_feature, w1p, b1p, w2p, b2p, c_out=c_out))
    assert jnp.allclose(out_small, ref(gloss_feature), atol=5e-2, rtol=5e-2)

    # 3) Ragged-rows Pallas path (partial last block + padded C_out slice +
    #    bf16 output for halved write bytes).
    B2, T2 = 3, 100  # rows=300, not a multiple of the 256-row tile
    x2 = jax.random.normal(kx2, (B2, T2, in_features), dtype=jnp.float32)
    out2 = vl_mapper_projection(x2, w1p, b1p, w2p, b2p, c_out=c_out,
                                row_tile=256, use_pallas=True,
                                out_dtype=jnp.bfloat16)
    out2 = jax.block_until_ready(out2)
    assert out2.shape == (B2, T2, out_features) and out2.dtype == jnp.bfloat16
    assert jnp.allclose(out2.astype(jnp.float32), ref(x2), atol=7e-2, rtol=7e-2), (
        float(jnp.max(jnp.abs(out2.astype(jnp.float32) - ref(x2)))))

    print("KERNEL_OK")
</pallas_src>

<mosaic_0001>
module attributes {stable_mosaic.version = 11 : i64} {
  func.func @_vl_mapper_kernel(%arg0: i32, %arg1: memref<16x32xf32, #tpu.memory_space<vmem>>, %arg2: memref<32x128xbf16, #tpu.memory_space<vmem>>, %arg3: memref<1x128xf32, #tpu.memory_space<vmem>>, %arg4: memref<128x128xbf16, #tpu.memory_space<vmem>>, %arg5: memref<1x128xf32, #tpu.memory_space<vmem>>, %arg6: memref<16x128xf32, #tpu.memory_space<vmem>>) attributes {dimension_semantics = [#tpu.dimension_semantics<parallel>], iteration_bounds = array<i64: 1>, scalar_prefetch = 0 : i64, scratch_operands = 0 : i64, tpu.core_type = #tpu.core_type<tc>, window_params = [{transform_indices = @transform_0, window_bounds = array<i64: 16, 32>}, {pipeline_mode = #tpu.pipeline_mode<synchronous>, transform_indices = @transform_1, window_bounds = array<i64: 32, 128>}, {pipeline_mode = #tpu.pipeline_mode<synchronous>, transform_indices = @transform_2, window_bounds = array<i64: 1, 128>}, {pipeline_mode = #tpu.pipeline_mode<synchronous>, transform_indices = @transform_3, window_bounds = array<i64: 128, 128>}, {pipeline_mode = #tpu.pipeline_mode<synchronous>, transform_indices = @transform_4, window_bounds = array<i64: 1, 128>}, {transform_indices = @transform_5, window_bounds = array<i64: 16, 128>}]} {
    %c0 = arith.constant 0 : index
    %c0_0 = arith.constant 0 : index
    %0 = vector.load %arg1[%c0, %c0_0] : memref<16x32xf32, #tpu.memory_space<vmem>>, vector<16x32xf32>
    %1 = arith.truncf %0 : vector<16x32xf32> to vector<16x32xbf16>
    %c0_1 = arith.constant 0 : index
    %c0_2 = arith.constant 0 : index
    %2 = vector.load %arg2[%c0_1, %c0_2] : memref<32x128xbf16, #tpu.memory_space<vmem>>, vector<32x128xbf16>
    %cst = arith.constant dense<0.000000e+00> : vector<16x128xf32>
    %3 = tpu.matmul %1, %2, %cst {dimension_numbers = #tpu.dot_dimension_numbers<[1], [0], [0], [1], [0, 0, 1, 1], [], []>} : vector<16x32xbf16>, vector<32x128xbf16>, vector<16x128xf32> -> vector<16x128xf32>
    %c0_3 = arith.constant 0 : index
    %c0_4 = arith.constant 0 : index
    %4 = vector.load %arg3[%c0_3, %c0_4] : memref<1x128xf32, #tpu.memory_space<vmem>>, vector<1x128xf32>
    %5 = vector.broadcast %4 : vector<1x128xf32> to vector<16x128xf32>
    %6 = arith.addf %3, %5 : vector<16x128xf32>
    %cst_5 = arith.constant 0.000000e+00 : f32
    %7 = vector.broadcast %cst_5 : f32 to vector<16x128xf32>
    %8 = arith.maximumf %6, %7 : vector<16x128xf32>
    %9 = arith.truncf %8 : vector<16x128xf32> to vector<16x128xbf16>
    %c0_6 = arith.constant 0 : index
    %c0_7 = arith.constant 0 : index
    %10 = vector.load %arg4[%c0_6, %c0_7] : memref<128x128xbf16, #tpu.memory_space<vmem>>, vector<128x128xbf16>
    %cst_8 = arith.constant dense<0.000000e+00> : vector<16x128xf32>
    %11 = tpu.matmul %9, %10, %cst_8 {dimension_numbers = #tpu.dot_dimension_numbers<[1], [0], [0], [1], [0, 0, 1, 1], [], []>} : vector<16x128xbf16>, vector<128x128xbf16>, vector<16x128xf32> -> vector<16x128xf32>
    %c0_9 = arith.constant 0 : index
    %c0_10 = arith.constant 0 : index
    %12 = vector.load %arg5[%c0_9, %c0_10] : memref<1x128xf32, #tpu.memory_space<vmem>>, vector<1x128xf32>
    %13 = vector.broadcast %12 : vector<1x128xf32> to vector<16x128xf32>
    %14 = arith.addf %11, %13 : vector<16x128xf32>
    %c0_11 = arith.constant 0 : index
    %c0_12 = arith.constant 0 : index
    %15 = vector.load %arg6[%c0_11, %c0_12] : memref<16x128xf32, #tpu.memory_space<vmem>>, vector<16x128xf32>
    tpu.vector_store %arg6[%c0_11, %c0_12], %14 {strides = array<i32>} : memref<16x128xf32, #tpu.memory_space<vmem>>, vector<16x128xf32>,
    return
  }
  func.func @transform_0(%arg0: i32) -> (i32, i32) {
    %c0_i32 = arith.constant 0 : i32
    %c0_i32_0 = arith.constant 0 : i32
    return %arg0, %c0_i32 : i32, i32
  }
  func.func @transform_1(%arg0: i32) -> (i32, i32) {
    %c0_i32 = arith.constant 0 : i32
    %c0_i32_0 = arith.constant 0 : i32
    %c0_i32_1 = arith.constant 0 : i32
    return %c0_i32, %c0_i32_0 : i32, i32
  }
  func.func @transform_2(%arg0: i32) -> (i32, i32) {
    %c0_i32 = arith.constant 0 : i32
    %c0_i32_0 = arith.constant 0 : i32
    %c0_i32_1 = arith.constant 0 : i32
    return %c0_i32, %c0_i32_0 : i32, i32
  }
  func.func @transform_3(%arg0: i32) -> (i32, i32) {
    %c0_i32 = arith.constant 0 : i32
    %c0_i32_0 = arith.constant 0 : i32
    %c0_i32_1 = arith.constant 0 : i32
    return %c0_i32, %c0_i32_0 : i32, i32
  }
  func.func @transform_4(%arg0: i32) -> (i32, i32) {
    %c0_i32 = arith.constant 0 : i32
    %c0_i32_0 = arith.constant 0 : i32
    %c0_i32_1 = arith.constant 0 : i32
    return %c0_i32, %c0_i32_0 : i32, i32
  }
  func.func @transform_5(%arg0: i32) -> (i32, i32) {
    %c0_i32 = arith.constant 0 : i32
    %c0_i32_0 = arith.constant 0 : i32
    return %arg0, %c0_i32 : i32, i32
  }
}

</mosaic_0001>

<bundles_post_ra>
// kernel: vl_mapper_projection.1
= control target key start
LH: loop header
LB: loop body
LE: loop exit
PB: predicated region body
PF: predicated region fallthrough
CT: control target
= control target key end

     0   :  { %10 = vsyncpa [#allocation3], 0  ;;  %s452_s0 = inlined_call_operand.hbm [shape: f32[16,32], index: 0, kind: input, shape index: {}]   ;;  %s453_s1 = inlined_call_operand.hbm [shape: bf16[32,128], index: 1, kind: input, shape index: {}]   ;;  %s454_s2 = inlined_call_operand.vmem [shape: f32[1,128], index: 2, kind: input, shape index: {}]   ;;  %s455_s3 = inlined_call_operand.hbm [shape: bf16[128,128], index: 3, kind: input, shape index: {}]   ;;  %s456_s4 = inlined_call_operand.vmem [shape: f32[1,128], index: 4, kind: input, shape index: {}]   ;;  %s457_s5 = inlined_call_operand.vmem [shape: f32[16,128], index: 5, kind: output, shape index: {}]  }
   0x1   :  { %11 = vsyncpa [#allocation5], 0  ;;  %s392_s18 = smov [#allocation4]  }
   0x2   :  { %s29_s19 = sshll.u32 %s392_s18, 4  ;;  %s30_s19 = int_to_ptr.vmem [resolvable:$true] %s29_s19 }
   0x3   :  { %s336_s20 = scalar_lea.vmem %s30_s19, 256  ;;  %p341_p1 = scmp.lt.s32.totalorder %s30_s19, %s30_s19 }
   0x4   :  { %p337_p0 = scmp.ne.s32.totalorder %s30_s19, %s336_s20  ;;  %p342_p2 = scmp.lt.s32.totalorder %s336_s20, %s336_s20 }
   0x6   :  { %p343_p3 = por %p342_p2, %p341_p1 }
   0x8   :  { %p344_p4 = pnand %p343_p3, %p337_p0 }
   0xa   :  { %347 = shalt.err (!%p344_p4)
}
   0xb   :  { %s393_s21 = smov 64   ;;  %s394_s22 = smov 4  }
   0xc   :  { %35 = dma.hbm_to_vmem [thread:$0]  %s453_s1, 256, %s30_s19, [#allocation5], %s393_s21, %s393_s21, %s394_s22  }
   0xd   :  { %s395_s25 = smov [#allocation2]  }
   0xe   :  { %s17_s26 = sshll.u32 %s395_s25, 4  ;;  %s18_s26 = int_to_ptr.vmem [resolvable:$true] %s17_s26 }
   0xf   :  { %s356_s27 = scalar_lea.vmem %s18_s26, 256  ;;  %p361_p6 = scmp.lt.s32.totalorder %s18_s26, %s18_s26 }
  0x10   :  { %p357_p5 = scmp.ne.s32.totalorder %s18_s26, %s356_s27  ;;  %p362_p7 = scmp.lt.s32.totalorder %s356_s27, %s356_s27 }
  0x12   :  { %p363_p8 = por %p362_p7, %p361_p6 }
  0x14   :  { %p364_p9 = pnand %p363_p8, %p357_p5 }
  0x16   :  { %367 = shalt.err (!%p364_p9)
}
  0x17   :  { %s396_s28 = smov 128   ;;  %s397_s29 = smov 8  }
  0x18   :  { %23 = dma.hbm_to_vmem [thread:$0]  %s452_s0, 256, %s18_s26, [#allocation3], %s396_s28, %s396_s28, %s397_s29  }
  0x19   :  { %s398_s7 = smov [#allocation6]  }
  0x1a   :  { %s43_s8 = sshll.u32 %s398_s7, 4  ;;  %s44_s8 = int_to_ptr.vmem [resolvable:$true] %s43_s8 }
  0x1b   :  { %s376_s1 = scalar_lea.vmem %s44_s8, 1024  ;;  %p381_p11 = scmp.lt.s32.totalorder %s44_s8, %s44_s8 }
  0x1c   :  { %p377_p10 = scmp.ne.s32.totalorder %s44_s8, %s376_s1  ;;  %p382_p12 = scmp.lt.s32.totalorder %s376_s1, %s376_s1 }
  0x1e   :  { %p383_p13 = por %p382_p12, %p381_p11 }
  0x20   :  { %p384_p0 = pnand %p383_p13, %p377_p10 }
  0x22   :  { %387 = shalt.err (!%p384_p0)
}
  0x23   :  { %49 = dma.hbm_to_vmem [thread:$0]  %s455_s3, 1024, %s44_s8, [#allocation5], %s393_s21, %s393_s21, %s394_s22  }
  0x24   :  { %388 = dma.done.wait [#allocation3], 256  }
  0x25   :  { %389 = vsyncadd [#allocation3], 4294967040 }
  0x26   :  { %390 = dma.done.wait [#allocation5], 1280  }
  0x27   :  { %391 = vsyncadd [#allocation5], 4294966016  ;;  %v399_v0 = vmov 0.0   ;;  %vm400_vm0 = vmmov 0   ;;  %v318_v1 = vld [vmem:[#allocation4 + $0x8] sm:$0xff]   ;;  %v319_v2 = vld [vmem:[#allocation4] sm:$0xff]  }
  0x28   :  { %281 = vmatprep.subr.bf16.mxu0 %v399_v0  ;;  %285 = vmatprep.mubr.msk.bf16.mxu0 %vm400_vm0, %v399_v0  ;;  %v62_v3 = vld [vmem:[#allocation2] sm:$0xff]  ;;  %v63_v4 = vld [vmem:[#allocation2 + $0x8] sm:$0xff]  ;;  %v320_v5 = vld [vmem:[#allocation6 + $0x38] sm:$0xff]   ;;  %vm88_vm1 = vcmask 261120  }
  0x29   :  { %289 = vmatprep.subr.bf16.mxu1 %v399_v0  ;;  %305 = vmatprep.mubr.msk.bf16.mxu1 %vm400_vm0, %v399_v0  ;;  %v64_v6 = vpack.c.bf16 %v63_v4, %v62_v3  ;;  %v321_v7 = vld [vmem:[#allocation6 + $0x30] sm:$0xff]   ;;  %v322_v8 = vld [vmem:[#allocation6 + $0x28] sm:$0xff]   ;;  %v323_v9 = vld [vmem:[#allocation6 + $0x20] sm:$0xff]  }
  0x2a   :  { %282 = vmatpush3.bf16.msra.mxu0 %v318_v1  ;;  %290 = vmatpush3.bf16.msra.mxu1 %v320_v5  ;;  %v324_v10 = vld [vmem:[#allocation6 + $0x18] sm:$0xff]   ;;  %v325_v11 = vld [vmem:[#allocation6 + $0x10] sm:$0xff]   ;;  %v326_v12 = vld [vmem:[#allocation6 + $0x8] sm:$0xff]  }
  0x2b   :  { %283 = vmatprep.subr.bf16.mxu0 %v399_v0  ;;  %291 = vmatprep.subr.bf16.mxu1 %v399_v0  ;;  %v327_v13 = vld [vmem:[#allocation6] sm:$0xff]  }
  0x2c   :  { %v256_v14 = vld [vmem:[%s454_s2] ss:$0 sm:$0xff] }
  0x2d   :  { %v260_v24 = vld [vmem:[%s456_s4] ss:$0 sm:$0xff] }
  0x2e   :  { %284 = vmatpush3.bf16.msra.mxu0 %v319_v2  ;;  %292 = vmatpush3.bf16.msra.mxu1 %v321_v7 }
  0x2f   :  { %293 = vmatprep.subr.bf16.mxu1 %v399_v0 }
  0x31   :  { %286 = vmatmul.mubr.msk.bf16.vlgmr.msra.gmra.mxu0 %vm88_vm1, %v64_v6 }
  0x32   :  { %294 = vmatpush3.bf16.msra.mxu1 %v322_v8 }
  0x33   :  { %295 = vmatprep.subr.bf16.mxu1 %v399_v0 }
  0x36   :  { %296 = vmatpush3.bf16.msra.mxu1 %v323_v9 }
  0x37   :  { %297 = vmatprep.subr.bf16.mxu1 %v399_v0 }
  0x3a   :  { %298 = vmatpush3.bf16.msra.mxu1 %v324_v10 }
  0x3b   :  { %299 = vmatprep.subr.bf16.mxu1 %v399_v0 }
  0x3e   :  { %300 = vmatpush3.bf16.msra.mxu1 %v325_v11 }
  0x3f   :  { %301 = vmatprep.subr.bf16.mxu1 %v399_v0 }
  0x42   :  { %302 = vmatpush3.bf16.msra.mxu1 %v326_v12 }
  0x43   :  { %303 = vmatprep.subr.bf16.mxu1 %v399_v0 }
  0x46   :  { %304 = vmatpush3.bf16.msra.mxu1 %v327_v13 }
  0xf1   :  { %v126_v15 = vpop.f32.mrf.mxu0 }
  0xf2   :  { %v127_v17 = vadd.f32 %v256_v14, %v126_v15 }
  0xf3   :  { %v287_v16 = vpop.f32.mrf.mxu0 }
  0xf4   :  { %v133_v21 = vmax.f32 %v127_v17, 0.0 }
  0xf5   :  { %v129_v18 = vpop.f32.mrf.mxu0 }
  0xf6   :  { %v130_v19 = vadd.f32 %v256_v14, %v129_v18 }
  0xf7   :  { %v288_v20 = vpop.f32.mrf.mxu0 }
  0xf8   :  { %v134_v22 = vmax.f32 %v130_v19, 0.0 }
  0xfa   :  { %v135_v23 = vpack.c.bf16 %v134_v22, %v133_v21 }
  0xfc   :  { %306 = vmatmul.mubr.bf16.vlgmr.msra.gmra.mxu1 %v135_v23 }
 0x1bc   :  { %v241_v25 = vpop.f32.mrf.mxu1 }
 0x1bd   :  { %v242_v26 = vadd.f32 %v260_v24, %v241_v25 }
 0x1be   :  { %v307_v27 = vpop.f32.mrf.mxu1 }
 0x1bf   :  { %248 = vst [vmem:[%s457_s5] sm:$0xff] %v242_v26 }
 0x1c0   :  { %v244_v28 = vpop.f32.mrf.mxu1 }
 0x1c1   :  { %v245_v29 = vadd.f32 %v260_v24, %v244_v28 }
 0x1c2   :  { %v308_v30 = vpop.f32.mrf.mxu1 }
 0x1c3   :  { %249 = vst [vmem:[%s457_s5 + $0x8] sm:$0xff] %v245_v29 }
 0x1c4   :  { %254 = vsyncpa [#allocation3], 1 }
 0x1c5   :  { %255 = vsyncpa [#allocation5], 1 }

</bundles_post_ra>
